<compile_context>
chip_gen: v7x
topology: tpu7x:2x2x1
jax: 0.10.0
libtpu: 0.0.40
codegen_flags: <defaults>
</compile_context>

<pallas_src>
import jax
import jax.numpy as jnp
from jax.experimental import pallas as pl
from jax.experimental.pallas import tpu as pltpu

# ---- model hyper-parameters (small, consistent with the module) ------------
N_INPUT = 1
N_OUTPUT = 1
N_HIDDEN = 32
N_LAYERS = 3          # 1 input layer, (N_LAYERS - 1) hidden layers, 1 output layer
BATCH = 500           # like x = torch.linspace(0, 1, 500).view(-1, 1)
TILE_B = 512          # batch columns per grid step (swept {256,512,1024}; 512)

# Packed-parameter block layout: (P_ROWS, 128) f32.
#   rows [l*32, (l+1)*32), cols [0, 32)   : hidden weight matrix wh[l]
#   rows [64, 96):
#     col 0 : w1 (first-layer weight, 32)
#     col 1 : b1 (first-layer bias,   32)
#     col 2+l : bh[l] (hidden biases, 32 each)
#     col 2+(N_LAYERS-1)   : wet (last-layer weight, 32)
#     col 2+(N_LAYERS-1)+1, row 64 : be (last-layer bias, scalar)
P_ROWS = (N_LAYERS - 1) * N_HIDDEN + N_HIDDEN     # 96  (multiple of 8)
P_COLS = 128
_R0 = (N_LAYERS - 1) * N_HIDDEN                   # 64
_COL_WE = 2 + (N_LAYERS - 1)                      # 4
_COL_BE = _COL_WE + 1                             # 5


def _round_up(a, m):
    return (a + m - 1) // m * m


def pack_params(params):
    """Pack (w1, b1, wh, bh, wet, be) into one lane-padded (96, 128) f32 block."""
    w1, b1, wh, bh, wet, be = params
    p = jnp.zeros((P_ROWS, P_COLS), jnp.float32)
    for l in range(N_LAYERS - 1):
        p = p.at[l * N_HIDDEN:(l + 1) * N_HIDDEN, :N_HIDDEN].set(wh[l])
        p = p.at[_R0:_R0 + N_HIDDEN, 2 + l].set(bh[l].reshape(-1))
    p = p.at[_R0:_R0 + N_HIDDEN, 0].set(w1.reshape(-1))
    p = p.at[_R0:_R0 + N_HIDDEN, 1].set(b1.reshape(-1))
    p = p.at[_R0:_R0 + N_HIDDEN, _COL_WE].set(wet.reshape(-1))
    p = p.at[_R0, _COL_BE].set(be.reshape(()))
    return p


def fcn_kernel(x_ref, p_ref, o_ref):
    # x_ref: (N_INPUT=1, tile_b), batch on the lane axis.
    x = x_ref[...]                                            # (1, tile_b) f32

    w1 = p_ref[_R0:_R0 + N_HIDDEN, 0:1]                       # (32, 1) f32
    b1 = p_ref[_R0:_R0 + N_HIDDEN, 1:2]                       # (32, 1) f32

    # First layer (K=1): VPU broadcast outer product, fused bias + tanh (f32).
    h = jnp.tanh(w1 * x + b1)                                 # (32, tile_b) f32

    # Hidden layers: (32,32) @ (32,tile_b) on the MXU.  Explicit bf16 operands
    # (MXU-native single pass), f32 accumulation; bias + tanh stay f32.
    for l in range(N_LAYERS - 1):
        w = p_ref[l * N_HIDDEN:(l + 1) * N_HIDDEN, 0:N_HIDDEN].astype(jnp.bfloat16)
        b = p_ref[_R0:_R0 + N_HIDDEN, 2 + l:3 + l]            # (32, 1) f32
        z = jnp.dot(w, h.astype(jnp.bfloat16),
                    preferred_element_type=jnp.float32)       # (32, tile_b) f32
        h = jnp.tanh(z + b)

    # Final layer (N=1): VPU multiply + sublane (XLU) reduce; lane-dense store.
    wet = p_ref[_R0:_R0 + N_HIDDEN, _COL_WE:_COL_WE + 1]      # (32, 1) f32
    be = p_ref[_R0:_R0 + 1, _COL_BE:_COL_BE + 1]              # (1, 1)  f32
    out = jnp.sum(wet * h, axis=0, keepdims=True) + be        # (1, tile_b) f32
    o_ref[...] = out.astype(o_ref.dtype)


def fcn_forward(x, params):
    """x: (B, N_INPUT) float32 -> (B, N_OUTPUT) float32."""
    B = x.shape[0]
    packed = pack_params(params)

    # Tiling: tile_b always divides b_pad exactly; padding waste <= 511 cols.
    #  - B <= TILE_B: single lane-aligned step (overhead-bound small case).
    #  - B  > TILE_B: 512-wide tiles, >= 2 "parallel" steps (v7x: both TCs).
    if B <= TILE_B:
        tile_b = _round_up(B, 128)
        b_pad = tile_b
    else:
        tile_b = TILE_B
        b_pad = _round_up(B, TILE_B)

    # Transpose to (features, batch) and zero-pad the batch (lane) axis.
    x_t = jnp.zeros((N_INPUT, b_pad), x.dtype).at[:, :B].set(x.T)

    grid = (b_pad // tile_b,)

    flops = (2 * (N_LAYERS - 1) * N_HIDDEN * N_HIDDEN + 4 * N_HIDDEN) * b_pad
    transcendentals = N_LAYERS * N_HIDDEN * b_pad
    bytes_accessed = 4 * (N_INPUT + N_OUTPUT) * b_pad + 4 * P_ROWS * P_COLS

    out_t = pl.pallas_call(
        fcn_kernel,
        out_shape=jax.ShapeDtypeStruct((N_OUTPUT, b_pad), x.dtype),
        grid_spec=pl.GridSpec(
            grid=grid,
            in_specs=[
                pl.BlockSpec((N_INPUT, tile_b), lambda i: (0, i)),   # x tile
                pl.BlockSpec((P_ROWS, P_COLS), lambda i: (0, 0)),    # packed params
            ],
            out_specs=pl.BlockSpec((N_OUTPUT, tile_b), lambda i: (0, i)),
        ),
        compiler_params=pltpu.CompilerParams(
            dimension_semantics=("parallel",),
        ),
        cost_estimate=pl.CostEstimate(
            flops=flops,
            transcendentals=transcendentals,
            bytes_accessed=bytes_accessed,
        ),
    )(x_t, packed)

    # Back to (B, N_OUTPUT) row layout; drop padded columns.
    return out_t[:, :B].T


def init_params(key):
    """Deterministic init mirroring PyTorch nn.Linear (weights in PyTorch
    (out, in) layout; biases as (out, 1) columns)."""
    ks = jax.random.split(key, 6)

    def unif(k, shape, fan_in):
        bound = 1.0 / jnp.sqrt(jnp.float32(fan_in))
        return jax.random.uniform(k, shape, jnp.float32, -bound, bound)

    w1 = unif(ks[0], (N_HIDDEN, N_INPUT), N_INPUT)               # (32, 1)
    b1 = unif(ks[1], (N_HIDDEN, 1), N_INPUT)                     # (32, 1)
    wh = unif(ks[2], (N_LAYERS - 1, N_HIDDEN, N_HIDDEN), N_HIDDEN)
    bh = unif(ks[3], (N_LAYERS - 1, N_HIDDEN, 1), N_HIDDEN)
    wet = unif(ks[4], (N_HIDDEN, N_OUTPUT), N_HIDDEN)            # fce.weight.T
    be = unif(ks[5], (N_OUTPUT, 1), N_HIDDEN)                    # (1, 1)
    return w1, b1, wh, bh, wet, be


def fcn_reference(x, params, matmul_dtype=jnp.float32):
    """Pure-JAX reference in standard (batch, features) row layout.
    matmul_dtype=bfloat16 mirrors the kernel's explicit MXU precision choice."""
    w1, b1, wh, bh, wet, be = params
    h = jnp.tanh(x @ w1.T + b1.reshape(1, -1))
    for l in range(N_LAYERS - 1):
        z = jnp.dot(h.astype(matmul_dtype), wh[l].T.astype(matmul_dtype),
                    preferred_element_type=jnp.float32)
        h = jnp.tanh(z + bh[l].reshape(1, -1))
    return h @ wet + be.reshape(1, -1)


if __name__ == "__main__":
    key = jax.random.PRNGKey(0)
    params = init_params(key)
    # x like torch.linspace(0, 1, 500).view(-1, 1)
    x = jnp.linspace(0.0, 1.0, BATCH, dtype=jnp.float32).reshape(-1, 1)

    fwd = jax.jit(fcn_forward)
    out = jax.block_until_ready(fwd(x, params))
    assert out.shape == (BATCH, N_OUTPUT)

    # Tight check vs a reference that mirrors the kernel's explicit bf16 MXU
    # operands; looser check vs the pure-f32 (PyTorch-semantics) reference,
    # documenting the bf16 matmul precision choice.
    ref_bf16 = fcn_reference(x, params, matmul_dtype=jnp.bfloat16)
    ref_f32 = fcn_reference(x, params, matmul_dtype=jnp.float32)
    assert jnp.allclose(out, ref_bf16, atol=1e-4, rtol=1e-4), \
        "mismatch vs precision-matched reference"
    assert jnp.allclose(out, ref_f32, atol=2e-2), \
        "mismatch vs f32 reference (beyond documented bf16 tolerance)"
    print("KERNEL_OK")
</pallas_src>

<mosaic_0001>
module attributes {stable_mosaic.version = 11 : i64} {
  func.func @fcn_kernel(%arg0: i32, %arg1: memref<1x512xf32, #tpu.memory_space<vmem>>, %arg2: memref<96x128xf32, #tpu.memory_space<vmem>>, %arg3: memref<1x512xf32, #tpu.memory_space<vmem>>) attributes {dimension_semantics = [#tpu.dimension_semantics<parallel>], iteration_bounds = array<i64: 1>, scalar_prefetch = 0 : i64, scratch_operands = 0 : i64, tpu.core_type = #tpu.core_type<tc>, window_params = [{transform_indices = @transform_0, window_bounds = array<i64: 1, 512>}, {pipeline_mode = #tpu.pipeline_mode<synchronous>, transform_indices = @transform_1, window_bounds = array<i64: 96, 128>}, {transform_indices = @transform_2, window_bounds = array<i64: 1, 512>}]} {
    %c0 = arith.constant 0 : index
    %c0_0 = arith.constant 0 : index
    %0 = vector.load %arg1[%c0, %c0_0] : memref<1x512xf32, #tpu.memory_space<vmem>>, vector<1x512xf32>
    %c64 = arith.constant 64 : index
    %c0_1 = arith.constant 0 : index
    %1 = vector.load %arg2[%c64, %c0_1] : memref<96x128xf32, #tpu.memory_space<vmem>>, vector<32x1xf32>
    %c64_2 = arith.constant 64 : index
    %c1 = arith.constant 1 : index
    %2 = vector.load %arg2[%c64_2, %c1] : memref<96x128xf32, #tpu.memory_space<vmem>>, vector<32x1xf32>
    %3 = vector.broadcast %1 : vector<32x1xf32> to vector<32x512xf32>
    %4 = vector.broadcast %0 : vector<1x512xf32> to vector<32x512xf32>
    %5 = arith.mulf %3, %4 : vector<32x512xf32>
    %6 = vector.broadcast %2 : vector<32x1xf32> to vector<32x512xf32>
    %7 = arith.addf %5, %6 : vector<32x512xf32>
    %8 = math.tanh %7 : vector<32x512xf32>
    %c0_3 = arith.constant 0 : index
    %c0_4 = arith.constant 0 : index
    %9 = vector.load %arg2[%c0_3, %c0_4] : memref<96x128xf32, #tpu.memory_space<vmem>>, vector<32x32xf32>
    %10 = arith.truncf %9 : vector<32x32xf32> to vector<32x32xbf16>
    %c64_5 = arith.constant 64 : index
    %c2 = arith.constant 2 : index
    %11 = vector.load %arg2[%c64_5, %c2] : memref<96x128xf32, #tpu.memory_space<vmem>>, vector<32x1xf32>
    %12 = arith.truncf %8 : vector<32x512xf32> to vector<32x512xbf16>
    %cst = arith.constant dense<0.000000e+00> : vector<32x512xf32>
    %13 = tpu.matmul %10, %12, %cst {dimension_numbers = #tpu.dot_dimension_numbers<[1], [0], [0], [1], [0, 0, 1, 1], [], []>} : vector<32x32xbf16>, vector<32x512xbf16>, vector<32x512xf32> -> vector<32x512xf32>
    %14 = vector.broadcast %11 : vector<32x1xf32> to vector<32x512xf32>
    %15 = arith.addf %13, %14 : vector<32x512xf32>
    %16 = math.tanh %15 : vector<32x512xf32>
    %c32 = arith.constant 32 : index
    %c0_6 = arith.constant 0 : index
    %17 = vector.load %arg2[%c32, %c0_6] : memref<96x128xf32, #tpu.memory_space<vmem>>, vector<32x32xf32>
    %18 = arith.truncf %17 : vector<32x32xf32> to vector<32x32xbf16>
    %c64_7 = arith.constant 64 : index
    %c3 = arith.constant 3 : index
    %19 = vector.load %arg2[%c64_7, %c3] : memref<96x128xf32, #tpu.memory_space<vmem>>, vector<32x1xf32>
    %20 = arith.truncf %16 : vector<32x512xf32> to vector<32x512xbf16>
    %cst_8 = arith.constant dense<0.000000e+00> : vector<32x512xf32>
    %21 = tpu.matmul %18, %20, %cst_8 {dimension_numbers = #tpu.dot_dimension_numbers<[1], [0], [0], [1], [0, 0, 1, 1], [], []>} : vector<32x32xbf16>, vector<32x512xbf16>, vector<32x512xf32> -> vector<32x512xf32>
    %22 = vector.broadcast %19 : vector<32x1xf32> to vector<32x512xf32>
    %23 = arith.addf %21, %22 : vector<32x512xf32>
    %24 = math.tanh %23 : vector<32x512xf32>
    %c64_9 = arith.constant 64 : index
    %c4 = arith.constant 4 : index
    %25 = vector.load %arg2[%c64_9, %c4] : memref<96x128xf32, #tpu.memory_space<vmem>>, vector<32x1xf32>
    %c64_10 = arith.constant 64 : index
    %c5 = arith.constant 5 : index
    %26 = vector.load %arg2[%c64_10, %c5] : memref<96x128xf32, #tpu.memory_space<vmem>>, vector<1x1xf32>
    %27 = vector.broadcast %25 : vector<32x1xf32> to vector<32x512xf32>
    %28 = arith.mulf %27, %24 : vector<32x512xf32>
    %cst_11 = arith.constant dense<0.000000e+00> : vector<512xf32>
    %29 = vector.multi_reduction <add>, %28, %cst_11 [0] : vector<32x512xf32> to vector<512xf32>
    %30 = vector.shape_cast %29 : vector<512xf32> to vector<1x512xf32>
    %31 = vector.broadcast %26 : vector<1x1xf32> to vector<1x512xf32>
    %32 = arith.addf %30, %31 : vector<1x512xf32>
    %c0_12 = arith.constant 0 : index
    %c0_13 = arith.constant 0 : index
    %33 = vector.load %arg3[%c0_12, %c0_13] : memref<1x512xf32, #tpu.memory_space<vmem>>, vector<1x512xf32>
    tpu.vector_store %arg3[%c0_12, %c0_13], %32 {strides = array<i32>} : memref<1x512xf32, #tpu.memory_space<vmem>>, vector<1x512xf32>,
    return
  }
  func.func @transform_0(%arg0: i32) -> (i32, i32) {
    %c0_i32 = arith.constant 0 : i32
    %c0_i32_0 = arith.constant 0 : i32
    return %c0_i32, %arg0 : i32, i32
  }
  func.func @transform_1(%arg0: i32) -> (i32, i32) {
    %c0_i32 = arith.constant 0 : i32
    %c0_i32_0 = arith.constant 0 : i32
    %c0_i32_1 = arith.constant 0 : i32
    return %c0_i32, %c0_i32_0 : i32, i32
  }
  func.func @transform_2(%arg0: i32) -> (i32, i32) {
    %c0_i32 = arith.constant 0 : i32
    %c0_i32_0 = arith.constant 0 : i32
    return %c0_i32, %arg0 : i32, i32
  }
}

</mosaic_0001>

<bundles_post_ra>
// kernel: fcn_forward.1
= control target key start
LH: loop header
LB: loop body
LE: loop exit
PB: predicated region body
PF: predicated region fallthrough
CT: control target
= control target key end

     0   :  { %v678_v0 = vmov 1   ;;  %v679_v1 = vmov 0   ;;  %v680_v6 = vmov 2   ;;  %v38_v7 = vlaneseq  ;;  %s800_s1 = inlined_call_operand.vmem [shape: f32[96,128], index: 1, kind: input, shape index: {}]   ;;  %s801_s0 = inlined_call_operand.vmem [shape: f32[1,512], index: 0, kind: input, shape index: {}]   ;;  %s802_s2 = inlined_call_operand.vmem [shape: f32[1,512], index: 2, kind: output, shape index: {}]  }
   0x1   :  { %571 = vset.pattern.permute.xlu1 %v678_v0  ;;  %570 = vset.pattern.permute.xlu0 %v679_v1  ;;  %v704_v2 = vld [vmem:[%s800_s1 + $0x40] sm:$0xff]  ;;  %v711_v3 = vld [vmem:[%s800_s1 + $0x48] sm:$0xff]  ;;  %v720_v4 = vld [vmem:[%s800_s1 + $0x50] sm:$0xff]  ;;  %vm152_vm0 = vcmask 261120  }
   0x2   :  { %75 = vperm.xlu1 %571, %v704_v2   ;;  %19 = vperm.xlu0 %570, %v704_v2   ;;  %v725_v5 = vld [vmem:[%s800_s1 + $0x58] sm:$0xff]  ;;  %v737_v8 = vshrl.u32 %v38_v7, 7  ;;  %v12_v13 = vld [vmem:[%s801_s0] sm:$0xf]  ;;  %vm548_vm1 = vcmp.lt.s32.totalorder %v38_v7, 512 }
   0x3   :  { %191 = vmatprep.mubr.bf16.mxu0 %v679_v1  ;;  %244 = vmatprep.mubr.bf16.mxu1 %v679_v1 }
   0x4   :  { %v40_v9 = vsub.s32 0, %v737_v8  ;;  %v44_v10 = vsub.s32 1, %v737_v8  ;;  %v48_v11 = vsub.s32 2, %v737_v8  ;;  %v52_v12 = vsub.s32 3, %v737_v8 }
   0x6   :  { %79 = vperm.xlu1 %571, %v711_v3   ;;  %24 = vperm.xlu0 %570, %v711_v3   ;;  %v41_v14 = vrot.slane %v12_v13, %v40_v9  ;;  %v45_v15 = vrot.slane %v12_v13, %v44_v10  ;;  %v49_v16 = vrot.slane %v12_v13, %v48_v11 }
   0x7   :  { %v53_v17 = vrot.slane %v12_v13, %v52_v12 }
   0xa   :  { %572 = vset.pattern.permute.xlu1 %v679_v1  ;;  %29 = vperm.xlu0 %570, %v720_v4  }
   0xb   :  { %34 = vperm.xlu1 %572, %v725_v5  }
   0xe   :  { %573 = vset.pattern.permute.xlu0 %v678_v0 }
   0xf   :  { %574 = vset.pattern.permute.xlu1 %v678_v0  ;;  %83 = vperm.xlu0 %573, %v720_v4  }
  0x10   :  { %87 = vperm.xlu1 %574, %v725_v5  }
  0x13   :  { %576 = vset.pattern.permute.xlu0 %v680_v6 }
  0x14   :  { %575 = vset.pattern.permute.xlu1 %v680_v6  ;;  %141 = vperm.xlu0 %576, %v711_v3  }
  0x15   :  { %137 = vperm.xlu1 %575, %v704_v2  }
  0x19   :  { %145 = vperm.xlu1 %575, %v720_v4  }
  0x1d   :  { %149 = vperm.xlu1 %575, %v725_v5  }
  0x81   :  { %v76_v18 = vpop.permute.xlu1 %75  ;;  %v20_v19 = vpop.permute.xlu0 %19 }
  0x82   :  { %v58_v20 = vmul.f32 %v41_v14, %v20_v19  ;;  %v59_v21 = vmul.f32 %v45_v15, %v20_v19  ;;  %v60_v22 = vmul.f32 %v49_v16, %v20_v19  ;;  %v61_v23 = vmul.f32 %v53_v17, %v20_v19 }
  0x84   :  { %v90_v24 = vadd.f32 %v76_v18, %v58_v20  ;;  %v91_v25 = vadd.f32 %v76_v18, %v59_v21  ;;  %v92_v26 = vadd.f32 %v76_v18, %v60_v22  ;;  %v93_v27 = vadd.f32 %v76_v18, %v61_v23  ;;  %v122_v20 = vld [vmem:[%s800_s1] sm:$0xff]  ;;  %v123_v21 = vld [vmem:[%s800_s1 + $0x8] sm:$0xff] }
  0x85   :  { %v80_v28 = vpop.permute.xlu1 %79  ;;  %v25_v29 = vpop.permute.xlu0 %24 }
  0x86   :  { %582 = vtanh.f32 %v90_v24  ;;  %v62_v30 = vmul.f32 %v41_v14, %v25_v29  ;;  %v63_v31 = vmul.f32 %v45_v15, %v25_v29  ;;  %v64_v32 = vmul.f32 %v49_v16, %v25_v29 }
  0x87   :  { %584 = vtanh.f32 %v91_v25  ;;  %v65_v33 = vmul.f32 %v53_v17, %v25_v29  ;;  %v125_v29 = vld [vmem:[%s800_s1 + $0x18] sm:$0xff] }
  0x88   :  { %586 = vtanh.f32 %v92_v26  ;;  %v94_v34 = vadd.f32 %v80_v28, %v62_v30  ;;  %v95_v35 = vadd.f32 %v80_v28, %v63_v31  ;;  %v96_v36 = vadd.f32 %v80_v28, %v64_v32 }
  0x89   :  { %588 = vtanh.f32 %v93_v27  ;;  %v97_v37 = vadd.f32 %v80_v28, %v65_v33  ;;  %v30_v38 = vpop.permute.xlu0 %29  ;;  %v126_v27 = vpack.c.bf16 %v123_v21, %v122_v20  ;;  %v124_v28 = vld [vmem:[%s800_s1 + $0x10] sm:$0xff]  ;;  %v681_v31 = vmov 3   ;;  %v439_v33 = vld [vmem:[%s800_s1 + $0x40] sm:$0x1] }
  0x8a   :  { %590 = vtanh.f32 %v94_v34  ;;  %v35_v39 = vpop.permute.xlu1 %34  ;;  %v66_v40 = vmul.f32 %v41_v14, %v30_v38  ;;  %v67_v41 = vmul.f32 %v45_v15, %v30_v38  ;;  %v68_v42 = vmul.f32 %v49_v16, %v30_v38  ;;  %578 = vset.pattern.permute.xlu1 %v681_v31  ;;  %577 = vset.pattern.permute.xlu0 %v681_v31  ;;  %v281_v31 = vld [vmem:[%s800_s1 + $0x20] sm:$0xff] }
  0x8b   :  { %592 = vtanh.f32 %v95_v35  ;;  %v69_v43 = vmul.f32 %v53_v17, %v30_v38  ;;  %v70_v45 = vmul.f32 %v41_v14, %v35_v39  ;;  %v71_v51 = vmul.f32 %v45_v15, %v35_v39  ;;  %300 = vperm.xlu1 %578, %v711_v3   ;;  %296 = vperm.xlu0 %577, %v704_v2  }
  0x8c   :  { %594 = vtanh.f32 %v96_v36  ;;  %v72_v54 = vmul.f32 %v49_v16, %v35_v39  ;;  %v73_v57 = vmul.f32 %v53_v17, %v35_v39  ;;  %v127_v30 = vpack.c.bf16 %v125_v29, %v124_v28 }
  0x8d   :  { %596 = vtanh.f32 %v97_v37  ;;  %v682_v32 = vmov 4   ;;  %v683_v34 = vmov 5  }
  0x8e   :  { %v84_v44 = vpop.permute.xlu0 %83 }
  0x8f   :  { %v98_v46 = vadd.f32 %v84_v44, %v66_v40  ;;  %v99_v47 = vadd.f32 %v84_v44, %v67_v41  ;;  %v100_v48 = vadd.f32 %v84_v44, %v68_v42  ;;  %v88_v49 = vpop.permute.xlu1 %87  ;;  %v101_v52 = vadd.f32 %v84_v44, %v69_v43  ;;  %304 = vperm.xlu1 %578, %v720_v4  }
  0x90   :  { %v583_v50 = vpop.eup %582  ;;  %v102_v55 = vadd.f32 %v88_v49, %v70_v45  ;;  %v103_v58 = vadd.f32 %v88_v49, %v71_v51  ;;  %v104_v60 = vadd.f32 %v88_v49, %v72_v54  ;;  %v105_v62 = vadd.f32 %v88_v49, %v73_v57  ;;  %308 = vperm.xlu0 %577, %v725_v5  }
  0x91   :  { %v585_v53 = vpop.eup %584  ;;  %598 = vtanh.f32 %v98_v46 }
  0x92   :  { %v587_v56 = vpop.eup %586  ;;  %600 = vtanh.f32 %v99_v47 }
  0x93   :  { %v589_v59 = vpop.eup %588  ;;  %602 = vtanh.f32 %v100_v48  ;;  %579 = vset.pattern.permute.xlu1 %v682_v32  ;;  %v142_v37 = vpop.permute.xlu0 %141 }
  0x94   :  { %v591_v61 = vpop.eup %590  ;;  %604 = vtanh.f32 %v101_v52  ;;  %580 = vset.pattern.permute.xlu0 %v682_v32  ;;  %441 = vperm.xlu1 %579, %v704_v2   ;;  %v138_v35 = vpop.permute.xlu1 %137  ;;  %v282_v32 = vld [vmem:[%s800_s1 + $0x28] sm:$0xff] }
  0x95   :  { %v593_v63 = vpop.eup %592  ;;  %606 = vtanh.f32 %v102_v55  ;;  %v128_v0 = vpack.c.bf16 %v591_v61, %v583_v50  ;;  %445 = vperm.xlu0 %580, %v711_v3  }
  0x96   :  { %v595_v6 = vpop.eup %594  ;;  %608 = vtanh.f32 %v103_v58  ;;  %v129_v9 = vpack.c.bf16 %v593_v63, %v585_v53 }
  0x97   :  { %v597_v10 = vpop.eup %596  ;;  %610 = vtanh.f32 %v104_v60  ;;  %v130_v11 = vpack.c.bf16 %v595_v6, %v587_v56 }
  0x98   :  { %612 = vtanh.f32 %v105_v62  ;;  %159 = vmatprep.subr.bf16.mxu0 %v129_v9  ;;  %v131_v12 = vpack.c.bf16 %v597_v10, %v589_v59  ;;  %449 = vperm.xlu1 %579, %v720_v4   ;;  %v146_v38 = vpop.permute.xlu1 %145 }
  0x99   :  { %160 = vmatpush1.bf16.msra.mxu0 %v128_v0  ;;  %581 = vset.pattern.permute.xlu0 %v683_v34 }
  0x9a   :  { %212 = vmatprep.subr.bf16.mxu1 %v131_v12  ;;  %510 = vperm.xlu0 %581, %v439_v33  }
  0x9b   :  { %v599_v13 = vpop.eup %598  ;;  %213 = vmatpush1.bf16.msra.mxu1 %v130_v11 }
  0x9c   :  { %v601_v14 = vpop.eup %600  ;;  %453 = vperm.xlu1 %579, %v725_v5   ;;  %v150_v51 = vpop.permute.xlu1 %149 }
  0x9d   :  { %v603_v15 = vpop.eup %602 }
  0x9e   :  { %v605_v16 = vpop.eup %604 }
  0x9f   :  { %v607_v17 = vpop.eup %606 }
  0xa0   :  { %v609_v18 = vpop.eup %608  ;;  %v132_v19 = vpack.c.bf16 %v607_v17, %v599_v13 }
  0xa1   :  { %v611_v22 = vpop.eup %610  ;;  %v133_v23 = vpack.c.bf16 %v609_v18, %v601_v14 }
  0xa2   :  { %v613_v24 = vpop.eup %612  ;;  %v134_v25 = vpack.c.bf16 %v611_v22, %v603_v15 }
  0xa3   :  { %161 = vmatprep.subr.bf16.mxu0 %v133_v23  ;;  %v135_v26 = vpack.c.bf16 %v613_v24, %v605_v16 }
  0xa4   :  { %162 = vmatpush1.bf16.msra.mxu0 %v132_v19 }
  0xa5   :  { %214 = vmatprep.subr.bf16.mxu1 %v135_v26 }
  0xa6   :  { %215 = vmatpush1.bf16.msra.mxu1 %v134_v25 }
  0xa7   :  { %555 = vmatmul.mubr.msk.bf16.vlgmr.msra.gmra.mrb[0].mxu0 %vm152_vm0, %v126_v27 }
  0xa8   :  { %201 = vmatprep.mubr.bf16.mxu0 %v679_v1 }
  0xa9   :  { %557 = vmatmul.mubr.msk.bf16.vlgmr.msra.gmra.mrb[0].mxu1 %vm152_vm0, %v126_v27 }
  0xaa   :  { %254 = vmatprep.mubr.bf16.mxu1 %v679_v1 }
  0xaf   :  { %556 = vmatmul.mubr.msk.bf16.gmra.mrb[4].mxu0 %vm152_vm0, %v127_v30 }
  0xb0   :  { %349 = vmatprep.mubr.bf16.mxu0 %v679_v1 }
  0xb1   :  { %558 = vmatmul.mubr.msk.bf16.gmra.mrb[4].mxu1 %vm152_vm0, %v127_v30 }
  0xb2   :  { %402 = vmatprep.mubr.bf16.mxu1 %v679_v1 }
 0x17a   :  { %v193_v36 = vpop.f32.mrb[0].mxu0 }
 0x17b   :  { %v194_v39 = vadd.f32 %v193_v36, %v138_v35  ;;  %v195_v40 = vpop.f32.mrb[1].mxu0  ;;  %v285_v36 = vpack.c.bf16 %v282_v32, %v281_v31 }
 0x17c   :  { %v246_v2 = vpop.f32.mrb[0].mxu1  ;;  %v196_v41 = vadd.f32 %v195_v40, %v138_v35  ;;  %v197_v3 = vpop.f32.mrb[2].mxu0 }
 0x17d   :  { %614 = vtanh.f32 %v194_v39  ;;  %v247_v42 = vadd.f32 %v246_v2, %v138_v35  ;;  %v248_v43 = vpop.f32.mrb[1].mxu1  ;;  %v198_v44 = vadd.f32 %v197_v3, %v142_v37  ;;  %v199_v45 = vpop.f32.mrb[3].mxu0 }
 0x17e   :  { %616 = vtanh.f32 %v196_v41  ;;  %v249_v4 = vadd.f32 %v248_v43, %v138_v35  ;;  %v250_v46 = vpop.f32.mrb[2].mxu1  ;;  %v200_v5 = vadd.f32 %v199_v45, %v142_v37  ;;  %v297_v40 = vpop.permute.xlu0 %296 }
 0x17f   :  { %618 = vtanh.f32 %v247_v42  ;;  %v251_v47 = vadd.f32 %v250_v46, %v142_v37  ;;  %v252_v48 = vpop.f32.mrb[3].mxu1  ;;  %v301_v41 = vpop.permute.xlu1 %300 }
 0x180   :  { %620 = vtanh.f32 %v249_v4  ;;  %v253_v49 = vadd.f32 %v252_v48, %v142_v37  ;;  %v283_v37 = vld [vmem:[%s800_s1 + $0x30] sm:$0xff] }
 0x181   :  { %622 = vtanh.f32 %v198_v44 }
 0x182   :  { %624 = vtanh.f32 %v251_v47  ;;  %v203_v50 = vpop.f32.mrb[4].mxu0 }
 0x183   :  { %626 = vtanh.f32 %v200_v5  ;;  %v204_v52 = vadd.f32 %v203_v50, %v146_v38  ;;  %v205_v53 = vpop.f32.mrb[5].mxu0 }
 0x184   :  { %628 = vtanh.f32 %v253_v49  ;;  %v256_v54 = vpop.f32.mrb[4].mxu1  ;;  %v206_v55 = vadd.f32 %v205_v53, %v146_v38  ;;  %v207_v56 = vpop.f32.mrb[6].mxu0 }
 0x185   :  { %630 = vtanh.f32 %v204_v52  ;;  %v257_v57 = vadd.f32 %v256_v54, %v146_v38  ;;  %v258_v58 = vpop.f32.mrb[5].mxu1  ;;  %v208_v59 = vadd.f32 %v207_v56, %v150_v51  ;;  %v209_v60 = vpop.f32.mrb[7].mxu0 }
 0x186   :  { %632 = vtanh.f32 %v206_v55  ;;  %v259_v61 = vadd.f32 %v258_v58, %v146_v38  ;;  %v260_v62 = vpop.f32.mrb[6].mxu1  ;;  %v210_v6 = vadd.f32 %v209_v60, %v150_v51  ;;  %v284_v38 = vld [vmem:[%s800_s1 + $0x38] sm:$0xff]  ;;  %v305_v53 = vpop.permute.xlu1 %304 }
 0x187   :  { %v615_v63 = vpop.eup %614  ;;  %634 = vtanh.f32 %v257_v57  ;;  %v261_v0 = vadd.f32 %v260_v62, %v150_v51  ;;  %v262_v9 = vpop.f32.mrb[7].mxu1  ;;  %v286_v39 = vpack.c.bf16 %v284_v38, %v283_v37 }
 0x188   :  { %v617_v10 = vpop.eup %616  ;;  %636 = vtanh.f32 %v259_v61  ;;  %v263_v11 = vadd.f32 %v262_v9, %v150_v51  ;;  %v309_v55 = vpop.permute.xlu0 %308 }
 0x189   :  { %v619_v12 = vpop.eup %618  ;;  %638 = vtanh.f32 %v208_v59 }
 0x18a   :  { %v621_v13 = vpop.eup %620  ;;  %640 = vtanh.f32 %v261_v0 }
 0x18b   :  { %v623_v14 = vpop.eup %622  ;;  %642 = vtanh.f32 %v210_v6 }
 0x18c   :  { %v625_v15 = vpop.eup %624  ;;  %644 = vtanh.f32 %v263_v11  ;;  %v287_v16 = vpack.c.bf16 %v623_v14, %v615_v63  ;;  %v442_v14 = vpop.permute.xlu1 %441 }
 0x18d   :  { %v627_v17 = vpop.eup %626  ;;  %v289_v18 = vpack.c.bf16 %v625_v15, %v619_v12  ;;  %v446_v15 = vpop.permute.xlu0 %445 }
 0x18e   :  { %v629_v19 = vpop.eup %628  ;;  %v288_v20 = vpack.c.bf16 %v627_v17, %v617_v10 }
 0x18f   :  { %v631_v21 = vpop.eup %630  ;;  %v290_v22 = vpack.c.bf16 %v629_v19, %v621_v13 }
 0x190   :  { %v633_v23 = vpop.eup %632  ;;  %317 = vmatprep.subr.bf16.mxu0 %v288_v20 }
 0x191   :  { %v635_v24 = vpop.eup %634  ;;  %370 = vmatprep.subr.bf16.mxu1 %v290_v22  ;;  %318 = vmatpush1.bf16.msra.mxu0 %v287_v16 }
 0x192   :  { %v637_v25 = vpop.eup %636  ;;  %371 = vmatpush1.bf16.msra.mxu1 %v289_v18 }
 0x193   :  { %v639_v26 = vpop.eup %638 }
 0x194   :  { %v641_v27 = vpop.eup %640  ;;  %v291_v28 = vpack.c.bf16 %v639_v26, %v631_v21 }
 0x195   :  { %v643_v29 = vpop.eup %642  ;;  %v293_v30 = vpack.c.bf16 %v641_v27, %v635_v24 }
 0x196   :  { %v645_v33 = vpop.eup %644  ;;  %v292_v34 = vpack.c.bf16 %v643_v29, %v633_v23 }
 0x197   :  { %v294_v35 = vpack.c.bf16 %v645_v33, %v637_v25 }
 0x198   :  { %319 = vmatprep.subr.bf16.mxu0 %v292_v34 }
 0x199   :  { %372 = vmatprep.subr.bf16.mxu1 %v294_v35  ;;  %320 = vmatpush1.bf16.msra.mxu0 %v291_v28  ;;  %v450_v28 = vpop.permute.xlu1 %449 }
 0x19a   :  { %373 = vmatpush1.bf16.msra.mxu1 %v293_v30 }
 0x19c   :  { %559 = vmatmul.mubr.msk.bf16.vlgmr.msra.gmra.mrb[8].mxu0 %vm152_vm0, %v285_v36 }
 0x19d   :  { %561 = vmatmul.mubr.msk.bf16.vlgmr.msra.gmra.mrb[8].mxu1 %vm152_vm0, %v285_v36  ;;  %359 = vmatprep.mubr.bf16.mxu0 %v679_v1 }
 0x19e   :  { %412 = vmatprep.mubr.bf16.mxu1 %v679_v1 }
 0x1a4   :  { %560 = vmatmul.mubr.msk.bf16.gmra.mrb[12].mxu0 %vm152_vm0, %v286_v39 }
 0x1a5   :  { %562 = vmatmul.mubr.msk.bf16.gmra.mrb[12].mxu1 %vm152_vm0, %v286_v39 }
 0x26f   :  { %v351_v2 = vpop.f32.mrb[8].mxu0 }
 0x270   :  { %v404_v3 = vpop.f32.mrb[8].mxu1  ;;  %v353_v42 = vpop.f32.mrb[9].mxu0  ;;  %v352_v43 = vadd.f32 %v351_v2, %v297_v40 }
 0x271   :  { %v406_v44 = vpop.f32.mrb[9].mxu1  ;;  %v355_v45 = vpop.f32.mrb[10].mxu0  ;;  %v354_v4 = vadd.f32 %v353_v42, %v297_v40  ;;  %v405_v5 = vadd.f32 %v404_v3, %v297_v40 }
 0x272   :  { %v356_v46 = vadd.f32 %v355_v45, %v301_v41  ;;  %v408_v47 = vpop.f32.mrb[10].mxu1  ;;  %646 = vtanh.f32 %v352_v43  ;;  %v357_v48 = vpop.f32.mrb[11].mxu0  ;;  %v407_v49 = vadd.f32 %v406_v44, %v297_v40 }
 0x273   :  { %v409_v1 = vadd.f32 %v408_v47, %v301_v41  ;;  %648 = vtanh.f32 %v354_v4  ;;  %v410_v50 = vpop.f32.mrb[11].mxu1  ;;  %v358_v51 = vadd.f32 %v357_v48, %v301_v41  ;;  %v454_v45 = vpop.permute.xlu1 %453 }
 0x274   :  { %650 = vtanh.f32 %v356_v46  ;;  %v411_v52 = vadd.f32 %v410_v50, %v301_v41 }
 0x275   :  { %652 = vtanh.f32 %v409_v1 }
 0x276   :  { %654 = vtanh.f32 %v405_v5 }
 0x277   :  { %656 = vtanh.f32 %v407_v49  ;;  %v361_v54 = vpop.f32.mrb[12].mxu0 }
 0x278   :  { %658 = vtanh.f32 %v358_v51  ;;  %v362_v56 = vadd.f32 %v361_v54, %v305_v53  ;;  %v414_v57 = vpop.f32.mrb[12].mxu1  ;;  %v363_v58 = vpop.f32.mrb[13].mxu0 }
 0x279   :  { %660 = vtanh.f32 %v411_v52  ;;  %v415_v59 = vadd.f32 %v414_v57, %v305_v53  ;;  %v364_v60 = vadd.f32 %v363_v58, %v305_v53  ;;  %v416_v61 = vpop.f32.mrb[13].mxu1  ;;  %v365_v62 = vpop.f32.mrb[14].mxu0 }
 0x27a   :  { %662 = vtanh.f32 %v362_v56  ;;  %v417_v63 = vadd.f32 %v416_v61, %v305_v53  ;;  %v366_v0 = vadd.f32 %v365_v62, %v309_v55  ;;  %v418_v6 = vpop.f32.mrb[14].mxu1  ;;  %v367_v9 = vpop.f32.mrb[15].mxu0 }
 0x27b   :  { %664 = vtanh.f32 %v415_v59  ;;  %v419_v10 = vadd.f32 %v418_v6, %v309_v55  ;;  %v420_v11 = vpop.f32.mrb[15].mxu1  ;;  %v368_v13 = vadd.f32 %v367_v9, %v309_v55 }
 0x27c   :  { %v647_v12 = vpop.eup %646  ;;  %666 = vtanh.f32 %v364_v60  ;;  %v421_v17 = vadd.f32 %v420_v11, %v309_v55 }
 0x27d   :  { %v649_v16 = vpop.eup %648  ;;  %668 = vtanh.f32 %v417_v63  ;;  %v456_v20 = vmul.f32 %v647_v12, %v442_v14 }
 0x27e   :  { %v651_v18 = vpop.eup %650  ;;  %670 = vtanh.f32 %v366_v0  ;;  %v457_v30 = vmul.f32 %v649_v16, %v442_v14 }
 0x27f   :  { %v653_v19 = vpop.eup %652  ;;  %672 = vtanh.f32 %v419_v10  ;;  %v460_v21 = vmul.f32 %v651_v18, %v446_v15  ;;  %v684_v10 = vmov 1966171168   ;;  %v511_v18 = vpop.permute.xlu0 %510 }
 0x280   :  { %v655_v22 = vpop.eup %654  ;;  %674 = vtanh.f32 %v368_v13  ;;  %v462_v23 = vmul.f32 %v653_v19, %v446_v15  ;;  %v524_v11 = vunpack.c.l.s4 %v684_v10 }
 0x281   :  { %v657_v24 = vpop.eup %656  ;;  %676 = vtanh.f32 %v421_v17  ;;  %v458_v25 = vmul.f32 %v655_v22, %v442_v14  ;;  %v472_v26 = vadd.f32 %v460_v21, %v456_v20 }
 0x282   :  { %v659_v27 = vpop.eup %658  ;;  %v459_v34 = vmul.f32 %v657_v24, %v442_v14  ;;  %v525_v21 = vunpack.c.0.s8 %v524_v11 }
 0x283   :  { %v661_v29 = vpop.eup %660  ;;  %v461_v31 = vmul.f32 %v659_v27, %v446_v15  ;;  %v490_v32 = vadd.f32 %v462_v23, %v458_v25 }
 0x284   :  { %v663_v33 = vpop.eup %662  ;;  %v463_v35 = vmul.f32 %v661_v29, %v446_v15 }
 0x285   :  { %v665_v36 = vpop.eup %664  ;;  %v464_v37 = vmul.f32 %v663_v33, %v450_v28  ;;  %v481_v38 = vadd.f32 %v461_v31, %v457_v30  ;;  %v528_v30 = vsub.s32 %v525_v21, %v737_v8 }
 0x286   :  { %v667_v39 = vpop.eup %666  ;;  %v466_v40 = vmul.f32 %v665_v36, %v450_v28  ;;  %v499_v2 = vadd.f32 %v463_v35, %v459_v34 }
 0x287   :  { %v669_v41 = vpop.eup %668  ;;  %v465_v3 = vmul.f32 %v667_v39, %v450_v28  ;;  %v473_v42 = vadd.f32 %v472_v26, %v464_v37 }
 0x288   :  { %v671_v43 = vpop.eup %670  ;;  %v467_v44 = vmul.f32 %v669_v41, %v450_v28  ;;  %v491_v4 = vadd.f32 %v490_v32, %v466_v40 }
 0x289   :  { %v673_v46 = vpop.eup %672  ;;  %v468_v47 = vmul.f32 %v671_v43, %v454_v45  ;;  %v482_v5 = vadd.f32 %v481_v38, %v465_v3 }
 0x28a   :  { %v675_v48 = vpop.eup %674  ;;  %v470_v1 = vmul.f32 %v673_v46, %v454_v45  ;;  %v500_v49 = vadd.f32 %v499_v2, %v467_v44 }
 0x28b   :  { %v677_v50 = vpop.eup %676  ;;  %v469_v51 = vmul.f32 %v675_v48, %v454_v45  ;;  %v474_v52 = vadd.f32 %v473_v42, %v468_v47 }
 0x28c   :  { %v471_v53 = vmul.f32 %v677_v50, %v454_v45  ;;  %v492_v54 = vadd.f32 %v491_v4, %v470_v1 }
 0x28d   :  { %v475_v55 = vrot.slane %v474_v52, 4  ;;  %v483_v56 = vadd.f32 %v482_v5, %v469_v51 }
 0x28e   :  { %v493_v57 = vrot.slane %v492_v54, 4  ;;  %v501_v58 = vadd.f32 %v500_v49, %v471_v53 }
 0x28f   :  { %v476_v59 = vadd.f32 %v475_v55, %v474_v52  ;;  %v484_v60 = vrot.slane %v483_v56, 4 }
 0x290   :  { %v494_v61 = vadd.f32 %v493_v57, %v492_v54  ;;  %v502_v62 = vrot.slane %v501_v58, 4 }
 0x291   :  { %v485_v63 = vadd.f32 %v484_v60, %v483_v56  ;;  %v477_v0 = vrot.slane %v476_v59, 2 }
 0x292   :  { %v503_v6 = vadd.f32 %v502_v62, %v501_v58  ;;  %v495_v9 = vrot.slane %v494_v61, 2 }
 0x293   :  { %v478_v12 = vadd.f32 %v477_v0, %v476_v59  ;;  %v486_v13 = vrot.slane %v485_v63, 2 }
 0x294   :  { %v496_v14 = vadd.f32 %v495_v9, %v494_v61  ;;  %v504_v15 = vrot.slane %v503_v6, 2 }
 0x295   :  { %v479_v16 = vrot.slane %v478_v12, 1  ;;  %v487_v17 = vadd.f32 %v486_v13, %v485_v63 }
 0x296   :  { %v497_v19 = vrot.slane %v496_v14, 1  ;;  %v505_v20 = vadd.f32 %v504_v15, %v503_v6 }
 0x297   :  { %v480_v22 = vadd.f32 %v479_v16, %v478_v12  ;;  %v488_v23 = vrot.slane %v487_v17, 1 }
 0x298   :  { %v498_v24 = vadd.f32 %v497_v19, %v496_v14  ;;  %v506_v25 = vrot.slane %v505_v20, 1 }
 0x299   :  { %v489_v26 = vadd.f32 %v488_v23, %v487_v17  ;;  %v513_v27 = vadd.f32 %v511_v18, %v480_v22 }
 0x29a   :  { %v507_v28 = vadd.f32 %v506_v25, %v505_v20  ;;  %v515_v29 = vadd.f32 %v511_v18, %v498_v24 }
 0x29b   :  { %v514_v31 = vadd.f32 %v511_v18, %v489_v26 }
 0x29c   :  { %v516_v32 = vadd.f32 %v511_v18, %v507_v28 }
 0x29d   :  { %v521_v33 = vcombine.low %v513_v27, %v514_v31 }
 0x29e   :  { %v522_v34 = vcombine.low %v515_v29, %v516_v32 }
 0x29f   :  { %v529_v35 = vrot.slane %v521_v33, %v528_v30 }
 0x2a0   :  { %v536_v36 = vrot.slane %v522_v34, %v528_v30 }
 0x2a2   :  { %v537_v37 = vcombine.low %v529_v35, %v536_v36 }
 0x2a4   :  { %v544_v38 = vrot.slane %v537_v37, %v528_v30 }
 0x2a6   :  { %550 = vst.msk [vmem:[%s802_s2] sm:$0xf] %vm548_vm1, %v544_v38 }

</bundles_post_ra>
